<compile_context>
chip_gen: v7x
topology: tpu7x:2x2x1
jax: 0.10.0
libtpu: 0.0.40
codegen_flags: <defaults>
</compile_context>

<pallas_src>
import functools
import math

import jax
import jax.numpy as jnp
from jax.experimental import pallas as pl
from jax.experimental.pallas import tpu as pltpu


_NEG_BIG = -1e30  # padding bias: exp(-1e30 - m) == 0, never the row max


# ----------------------------- Pallas kernel ------------------------------ #

def _fused_classifier_kernel(x_ref, *refs, num_hidden, num_atoms, c_pad):
    """refs = [w0, b0, ..., w_{H-1}, b_{H-1}, w_out, b_out, o_ref].

    x:      (bb, Din0)      activation tile (batch block)
    w_l:    (Din_l, Dout_l) pre-transposed hidden weights
    b_l:    (1, Dout_l)
    w_out:  (Din, A*Cp)     flattened, class-padded fc_out weight
    b_out:  (1, A*Cp)       padded entries = -1e30
    o:      (bb, A*Cp)      per-atom log-softmax, still class-padded
    """
    o_ref = refs[-1]
    w_out_ref = refs[2 * num_hidden]
    b_out_ref = refs[2 * num_hidden + 1]

    x = x_ref[...]
    for l in range(num_hidden):  # static unroll; empty for default n_h=1
        w = refs[2 * l][...]
        b = refs[2 * l + 1][...]
        y = jnp.dot(x, w, preferred_element_type=jnp.float32) + b
        x = jnp.maximum(y, 0.0)

    # Single wide MXU matmul for all atoms at once; result stays 2-D and
    # lane-dense (no in-kernel relayout to 3-D).
    y = jnp.dot(x, w_out_ref[...], preferred_element_type=jnp.float32)
    y = y + b_out_ref[...]                                   # (bb, A*Cp)

    # Per-atom log-softmax over 128-lane-aligned column slices. Each slice is
    # a clean lane-tile view and each store is an unmasked, lane-dense vst.
    # Padded class columns carry logit -1e30 -> exp underflows to exactly 0.
    for k in range(num_atoms):
        lo = k * c_pad
        yk = y[:, lo:lo + c_pad]                             # (bb, Cp)
        m = jnp.max(yk, axis=-1, keepdims=True)
        lse = m + jnp.log(jnp.sum(jnp.exp(yk - m), axis=-1, keepdims=True))
        o_ref[:, lo:lo + c_pad] = (yk - lse).astype(o_ref.dtype)


# ------------------------- parameter preparation --------------------------- #

def init_classifier_params(key, in_fea_len=64, h_fea_len=32, n_h=1,
                           num_atoms=5, num_classes=86):
    """Raw params in PyTorch nn.Linear layout (w: (out, in), b: (out,))."""
    hidden = []
    kiter = key
    if n_h > 1:
        dims = [(in_fea_len * num_atoms, h_fea_len * num_atoms)]
        for _ in range(1, n_h - 1):
            dims.append((h_fea_len * num_atoms, h_fea_len * num_atoms))
        for din, dout in dims:
            kiter, kw, kb = jax.random.split(kiter, 3)
            bound = 1.0 / math.sqrt(din)
            w = jax.random.uniform(kw, (dout, din), jnp.float32, -bound, bound)
            bb = jax.random.uniform(kb, (dout,), jnp.float32, -bound, bound)
            hidden.append((w, bb))
        h = h_fea_len
    else:
        h = in_fea_len
    kiter, kw, kb = jax.random.split(kiter, 3)
    din = h * num_atoms
    dout = num_classes * num_atoms
    bound = 1.0 / math.sqrt(din)
    w_out = jax.random.uniform(kw, (dout, din), jnp.float32, -bound, bound)
    b_out = jax.random.uniform(kb, (dout,), jnp.float32, -bound, bound)
    return {"hidden": hidden, "fc_out": (w_out, b_out),
            "num_atoms": num_atoms, "num_classes": num_classes}


def prepare_params(params):
    """One-time re-layout: fold the feature tile, transpose, pad classes to 128."""
    a = params["num_atoms"]
    c = params["num_classes"]
    c_pad = ((c + 127) // 128) * 128

    hidden_raw = params["hidden"]
    hidden = []
    if hidden_raw:
        # Fold x = tile(h, A) into the FIRST hidden layer: sum the A repeated
        # Din blocks of its weight, so the kernel consumes hidden_fea directly.
        w0, b0 = hidden_raw[0]
        dout, din_full = w0.shape
        f = din_full // a
        w0f = w0.reshape(dout, a, f).sum(axis=1)              # (Dout, F)
        hidden.append((jnp.asarray(w0f.T), b0.reshape(1, dout)))
        for (w, b) in hidden_raw[1:]:
            hidden.append((jnp.asarray(w.T), b.reshape(1, w.shape[0])))

    w_out, b_out = params["fc_out"]                           # (A*C, Din), (A*C,)
    dout_full, din_full = w_out.shape
    if not hidden_raw:
        # n_h == 1: fold the tile into fc_out instead (K: A*F -> F).
        f = din_full // a
        w_out = w_out.reshape(dout_full, a, f).sum(axis=1)    # (A*C, F)
        din = f
    else:
        din = din_full

    # (A*C, Din) -> (Din, A*Cp), column index = atom * Cp + class.
    w3 = w_out.reshape(a, c, din).transpose(0, 2, 1)          # (A, Din, C)
    w3 = jnp.pad(w3, ((0, 0), (0, 0), (0, c_pad - c)))        # (A, Din, Cp)
    w_flat = w3.transpose(1, 0, 2).reshape(din, a * c_pad)    # (Din, A*Cp)

    b2 = b_out.reshape(a, c)
    b2 = jnp.pad(b2, ((0, 0), (0, c_pad - c)), constant_values=_NEG_BIG)
    b_flat = b2.reshape(1, a * c_pad)

    return {"hidden": hidden, "fc_out": (w_flat, b_flat),
            "num_atoms": a, "num_classes": c, "c_pad": c_pad}


# -------------------------------- forward ---------------------------------- #

def _pick_batch_block(batch):
    """Single block for tiny batches; >= 2 parallel steps once it pays off
    (keeps both v7x TensorCores busy). Capped at 512 rows (VMEM headroom)."""
    if batch < 64:
        return batch
    half = pl.cdiv(batch, 2)
    half = ((half + 7) // 8) * 8          # keep sublane-aligned block rows
    return min(512, half)


def classifier_forward(prepped, hidden_fea, *, return_padded=False,
                       out_dtype=jnp.float32):
    """Matches Classifier.forward; returns (batch*num_atoms, num_classes).

    With return_padded=True, returns the (batch, A, Cp) class-padded view
    instead (free reshape of the kernel output) so consumers can gather the
    target-class column directly and skip the depad pass entirely.
    On store/HBM-bound chips (v5e) pass out_dtype=jnp.bfloat16 to halve the
    dominant output writeback; compute stays f32.
    """
    batch, fin = hidden_fea.shape
    a = prepped["num_atoms"]
    c = prepped["num_classes"]
    c_pad = prepped["c_pad"]
    hidden = prepped["hidden"]
    w_flat, b_flat = prepped["fc_out"]

    bb = _pick_batch_block(batch)
    grid = (pl.cdiv(batch, bb),)

    flat_params = []
    in_specs = [pl.BlockSpec((bb, fin), lambda i: (i, 0))]
    # Weights/biases are whole-array blocks, constant across grid steps (the
    # pipeline re-uses the already-resident buffer; left at default buffering).
    for (w, b) in hidden:
        flat_params += [w, b]
        in_specs += [pl.BlockSpec(w.shape, lambda i: (0, 0)),
                     pl.BlockSpec(b.shape, lambda i: (0, 0))]
    flat_params += [w_flat, b_flat]
    in_specs += [pl.BlockSpec(w_flat.shape, lambda i: (0, 0)),
                 pl.BlockSpec(b_flat.shape, lambda i: (0, 0))]
    # 2-D lane-dense output block (last dim A*Cp is a multiple of 128).
    out_spec = pl.BlockSpec((bb, a * c_pad), lambda i: (i, 0))

    kernel = functools.partial(
        _fused_classifier_kernel,
        num_hidden=len(hidden), num_atoms=a, c_pad=c_pad)

    out2 = pl.pallas_call(
        kernel,
        out_shape=jax.ShapeDtypeStruct((batch, a * c_pad), out_dtype),
        grid=grid,
        in_specs=in_specs,
        out_specs=out_spec,
        compiler_params=pltpu.CompilerParams(
            dimension_semantics=("parallel",),
            vmem_limit_bytes=32 * 1024 * 1024),
    )(hidden_fea, *flat_params)

    if return_padded:
        return out2.reshape(batch, a, c_pad)   # metadata-only view

    # Strip class padding; matches torch's out.view(-1, num_classes) row order.
    # (At scale, prefer return_padded=True and gather in the consumer.)
    return out2.reshape(batch, a, c_pad)[:, :, :c].reshape(batch * a, c)


def reference_forward(params, hidden_fea):
    """Pure-JAX reference faithful to the PyTorch module (full f32 precision)."""
    a = params["num_atoms"]
    c = params["num_classes"]
    hp = jax.lax.Precision.HIGHEST
    x = jnp.tile(hidden_fea, (1, a))
    for (w, b) in params["hidden"]:
        x = jnp.maximum(jnp.dot(x, w.T, precision=hp) + b, 0.0)
    w, b = params["fc_out"]
    y = jnp.dot(x, w.T, precision=hp) + b
    y = y.reshape(-1, c)
    return jax.nn.log_softmax(y, axis=1)


# --------------------------------- main ------------------------------------ #

if __name__ == "__main__":
    in_fea_len, h_fea_len = 64, 32
    num_atoms, num_classes = 5, 86
    batch = 2

    key = jax.random.PRNGKey(0)

    for n_h in (1, 2):  # default config (no hidden layers) + one hidden layer
        k_param, k_x = jax.random.split(jax.random.fold_in(key, n_h))
        params = init_classifier_params(k_param, in_fea_len, h_fea_len, n_h,
                                        num_atoms, num_classes)
        prepped = prepare_params(params)
        hidden_fea = jax.random.normal(k_x, (batch, in_fea_len), dtype=jnp.float32)

        out = jax.block_until_ready(classifier_forward(prepped, hidden_fea))
        assert out.shape == (batch * num_atoms, num_classes), out.shape

        ref = jax.block_until_ready(reference_forward(params, hidden_fea))
        max_err = float(jnp.max(jnp.abs(out - ref)))
        # Kernel uses default TPU matmul precision vs. HIGHEST in the reference;
        # at K = 64-160 this stays well inside 5e-4.
        assert jnp.allclose(out, ref, atol=5e-4, rtol=5e-4), (n_h, max_err)
        # rows of a log-softmax must exp-sum to 1
        assert jnp.allclose(jnp.sum(jnp.exp(out), axis=1), 1.0, atol=1e-4)

        # padded path: free view, valid columns must match
        padded = jax.block_until_ready(
            classifier_forward(prepped, hidden_fea, return_padded=True))
        assert padded.shape == (batch, num_atoms, prepped["c_pad"])
        assert jnp.allclose(
            padded[:, :, :num_classes].reshape(batch * num_atoms, num_classes),
            out)

    print("KERNEL_OK")
</pallas_src>

<mosaic_0001>
module attributes {stable_mosaic.version = 11 : i64} {
  func.func @_fused_classifier_kernel(%arg0: i32, %arg1: memref<2x64xf32, #tpu.memory_space<vmem>>, %arg2: memref<64x640xf32, #tpu.memory_space<vmem>>, %arg3: memref<1x640xf32, #tpu.memory_space<vmem>>, %arg4: memref<2x640xf32, #tpu.memory_space<vmem>>) attributes {dimension_semantics = [#tpu.dimension_semantics<parallel>], iteration_bounds = array<i64: 1>, scalar_prefetch = 0 : i64, scratch_operands = 0 : i64, tpu.core_type = #tpu.core_type<tc>, window_params = [{transform_indices = @transform_0, window_bounds = array<i64: 2, 64>}, {pipeline_mode = #tpu.pipeline_mode<synchronous>, transform_indices = @transform_1, window_bounds = array<i64: 64, 640>}, {pipeline_mode = #tpu.pipeline_mode<synchronous>, transform_indices = @transform_2, window_bounds = array<i64: 1, 640>}, {transform_indices = @transform_3, window_bounds = array<i64: 2, 640>}]} {
    %c0 = arith.constant 0 : index
    %c0_0 = arith.constant 0 : index
    %0 = vector.load %arg1[%c0, %c0_0] : memref<2x64xf32, #tpu.memory_space<vmem>>, vector<2x64xf32>
    %c0_1 = arith.constant 0 : index
    %c0_2 = arith.constant 0 : index
    %1 = vector.load %arg2[%c0_1, %c0_2] : memref<64x640xf32, #tpu.memory_space<vmem>>, vector<64x640xf32>
    %cst = arith.constant dense<0.000000e+00> : vector<2x640xf32>
    %2 = tpu.matmul %0, %1, %cst {dimension_numbers = #tpu.dot_dimension_numbers<[1], [0], [0], [1], [0, 0, 1, 1], [], []>} : vector<2x64xf32>, vector<64x640xf32>, vector<2x640xf32> -> vector<2x640xf32>
    %c0_3 = arith.constant 0 : index
    %c0_4 = arith.constant 0 : index
    %3 = vector.load %arg3[%c0_3, %c0_4] : memref<1x640xf32, #tpu.memory_space<vmem>>, vector<1x640xf32>
    %4 = vector.broadcast %3 : vector<1x640xf32> to vector<2x640xf32>
    %5 = arith.addf %2, %4 : vector<2x640xf32>
    %6 = vector.extract_strided_slice %5 {offsets = [0, 0], sizes = [2, 128], strides = [1, 1]} : vector<2x640xf32> to vector<2x128xf32>
    %cst_5 = arith.constant dense<0xFF800000> : vector<2xf32>
    %7 = vector.multi_reduction <maximumf>, %6, %cst_5 [1] : vector<2x128xf32> to vector<2xf32>
    %8 = vector.shape_cast %7 : vector<2xf32> to vector<2x1xf32>
    %9 = vector.broadcast %8 : vector<2x1xf32> to vector<2x128xf32>
    %10 = arith.subf %6, %9 : vector<2x128xf32>
    %11 = math.exp %10 : vector<2x128xf32>
    %cst_6 = arith.constant dense<0.000000e+00> : vector<2xf32>
    %12 = vector.multi_reduction <add>, %11, %cst_6 [1] : vector<2x128xf32> to vector<2xf32>
    %13 = vector.shape_cast %12 : vector<2xf32> to vector<2x1xf32>
    %14 = math.log %13 : vector<2x1xf32>
    %15 = arith.addf %8, %14 : vector<2x1xf32>
    %16 = vector.broadcast %15 : vector<2x1xf32> to vector<2x128xf32>
    %17 = arith.subf %6, %16 : vector<2x128xf32>
    %c0_7 = arith.constant 0 : index
    %c0_8 = arith.constant 0 : index
    %18 = vector.load %arg4[%c0_7, %c0_8] : memref<2x640xf32, #tpu.memory_space<vmem>>, vector<2x128xf32>
    tpu.vector_store %arg4[%c0_7, %c0_8], %17 {strides = array<i32>} : memref<2x640xf32, #tpu.memory_space<vmem>>, vector<2x128xf32>,
    %19 = vector.extract_strided_slice %5 {offsets = [0, 128], sizes = [2, 128], strides = [1, 1]} : vector<2x640xf32> to vector<2x128xf32>
    %cst_9 = arith.constant dense<0xFF800000> : vector<2xf32>
    %20 = vector.multi_reduction <maximumf>, %19, %cst_9 [1] : vector<2x128xf32> to vector<2xf32>
    %21 = vector.shape_cast %20 : vector<2xf32> to vector<2x1xf32>
    %22 = vector.broadcast %21 : vector<2x1xf32> to vector<2x128xf32>
    %23 = arith.subf %19, %22 : vector<2x128xf32>
    %24 = math.exp %23 : vector<2x128xf32>
    %cst_10 = arith.constant dense<0.000000e+00> : vector<2xf32>
    %25 = vector.multi_reduction <add>, %24, %cst_10 [1] : vector<2x128xf32> to vector<2xf32>
    %26 = vector.shape_cast %25 : vector<2xf32> to vector<2x1xf32>
    %27 = math.log %26 : vector<2x1xf32>
    %28 = arith.addf %21, %27 : vector<2x1xf32>
    %29 = vector.broadcast %28 : vector<2x1xf32> to vector<2x128xf32>
    %30 = arith.subf %19, %29 : vector<2x128xf32>
    %c0_11 = arith.constant 0 : index
    %c128 = arith.constant 128 : index
    %31 = vector.load %arg4[%c0_11, %c128] : memref<2x640xf32, #tpu.memory_space<vmem>>, vector<2x128xf32>
    tpu.vector_store %arg4[%c0_11, %c128], %30 {strides = array<i32>} : memref<2x640xf32, #tpu.memory_space<vmem>>, vector<2x128xf32>,
    %32 = vector.extract_strided_slice %5 {offsets = [0, 256], sizes = [2, 128], strides = [1, 1]} : vector<2x640xf32> to vector<2x128xf32>
    %cst_12 = arith.constant dense<0xFF800000> : vector<2xf32>
    %33 = vector.multi_reduction <maximumf>, %32, %cst_12 [1] : vector<2x128xf32> to vector<2xf32>
    %34 = vector.shape_cast %33 : vector<2xf32> to vector<2x1xf32>
    %35 = vector.broadcast %34 : vector<2x1xf32> to vector<2x128xf32>
    %36 = arith.subf %32, %35 : vector<2x128xf32>
    %37 = math.exp %36 : vector<2x128xf32>
    %cst_13 = arith.constant dense<0.000000e+00> : vector<2xf32>
    %38 = vector.multi_reduction <add>, %37, %cst_13 [1] : vector<2x128xf32> to vector<2xf32>
    %39 = vector.shape_cast %38 : vector<2xf32> to vector<2x1xf32>
    %40 = math.log %39 : vector<2x1xf32>
    %41 = arith.addf %34, %40 : vector<2x1xf32>
    %42 = vector.broadcast %41 : vector<2x1xf32> to vector<2x128xf32>
    %43 = arith.subf %32, %42 : vector<2x128xf32>
    %c0_14 = arith.constant 0 : index
    %c256 = arith.constant 256 : index
    %44 = vector.load %arg4[%c0_14, %c256] : memref<2x640xf32, #tpu.memory_space<vmem>>, vector<2x128xf32>
    tpu.vector_store %arg4[%c0_14, %c256], %43 {strides = array<i32>} : memref<2x640xf32, #tpu.memory_space<vmem>>, vector<2x128xf32>,
    %45 = vector.extract_strided_slice %5 {offsets = [0, 384], sizes = [2, 128], strides = [1, 1]} : vector<2x640xf32> to vector<2x128xf32>
    %cst_15 = arith.constant dense<0xFF800000> : vector<2xf32>
    %46 = vector.multi_reduction <maximumf>, %45, %cst_15 [1] : vector<2x128xf32> to vector<2xf32>
    %47 = vector.shape_cast %46 : vector<2xf32> to vector<2x1xf32>
    %48 = vector.broadcast %47 : vector<2x1xf32> to vector<2x128xf32>
    %49 = arith.subf %45, %48 : vector<2x128xf32>
    %50 = math.exp %49 : vector<2x128xf32>
    %cst_16 = arith.constant dense<0.000000e+00> : vector<2xf32>
    %51 = vector.multi_reduction <add>, %50, %cst_16 [1] : vector<2x128xf32> to vector<2xf32>
    %52 = vector.shape_cast %51 : vector<2xf32> to vector<2x1xf32>
    %53 = math.log %52 : vector<2x1xf32>
    %54 = arith.addf %47, %53 : vector<2x1xf32>
    %55 = vector.broadcast %54 : vector<2x1xf32> to vector<2x128xf32>
    %56 = arith.subf %45, %55 : vector<2x128xf32>
    %c0_17 = arith.constant 0 : index
    %c384 = arith.constant 384 : index
    %57 = vector.load %arg4[%c0_17, %c384] : memref<2x640xf32, #tpu.memory_space<vmem>>, vector<2x128xf32>
    tpu.vector_store %arg4[%c0_17, %c384], %56 {strides = array<i32>} : memref<2x640xf32, #tpu.memory_space<vmem>>, vector<2x128xf32>,
    %58 = vector.extract_strided_slice %5 {offsets = [0, 512], sizes = [2, 128], strides = [1, 1]} : vector<2x640xf32> to vector<2x128xf32>
    %cst_18 = arith.constant dense<0xFF800000> : vector<2xf32>
    %59 = vector.multi_reduction <maximumf>, %58, %cst_18 [1] : vector<2x128xf32> to vector<2xf32>
    %60 = vector.shape_cast %59 : vector<2xf32> to vector<2x1xf32>
    %61 = vector.broadcast %60 : vector<2x1xf32> to vector<2x128xf32>
    %62 = arith.subf %58, %61 : vector<2x128xf32>
    %63 = math.exp %62 : vector<2x128xf32>
    %cst_19 = arith.constant dense<0.000000e+00> : vector<2xf32>
    %64 = vector.multi_reduction <add>, %63, %cst_19 [1] : vector<2x128xf32> to vector<2xf32>
    %65 = vector.shape_cast %64 : vector<2xf32> to vector<2x1xf32>
    %66 = math.log %65 : vector<2x1xf32>
    %67 = arith.addf %60, %66 : vector<2x1xf32>
    %68 = vector.broadcast %67 : vector<2x1xf32> to vector<2x128xf32>
    %69 = arith.subf %58, %68 : vector<2x128xf32>
    %c0_20 = arith.constant 0 : index
    %c512 = arith.constant 512 : index
    %70 = vector.load %arg4[%c0_20, %c512] : memref<2x640xf32, #tpu.memory_space<vmem>>, vector<2x128xf32>
    tpu.vector_store %arg4[%c0_20, %c512], %69 {strides = array<i32>} : memref<2x640xf32, #tpu.memory_space<vmem>>, vector<2x128xf32>,
    return
  }
  func.func @transform_0(%arg0: i32) -> (i32, i32) {
    %c0_i32 = arith.constant 0 : i32
    %c0_i32_0 = arith.constant 0 : i32
    return %arg0, %c0_i32 : i32, i32
  }
  func.func @transform_1(%arg0: i32) -> (i32, i32) {
    %c0_i32 = arith.constant 0 : i32
    %c0_i32_0 = arith.constant 0 : i32
    %c0_i32_1 = arith.constant 0 : i32
    return %c0_i32, %c0_i32_0 : i32, i32
  }
  func.func @transform_2(%arg0: i32) -> (i32, i32) {
    %c0_i32 = arith.constant 0 : i32
    %c0_i32_0 = arith.constant 0 : i32
    %c0_i32_1 = arith.constant 0 : i32
    return %c0_i32, %c0_i32_0 : i32, i32
  }
  func.func @transform_3(%arg0: i32) -> (i32, i32) {
    %c0_i32 = arith.constant 0 : i32
    %c0_i32_0 = arith.constant 0 : i32
    return %arg0, %c0_i32 : i32, i32
  }
}

</mosaic_0001>

<bundles_post_ra>
// kernel: tpu_custom_call.1
= control target key start
LH: loop header
LB: loop body
LE: loop exit
PB: predicated region body
PF: predicated region fallthrough
CT: control target
= control target key end

     0   :  { %8 = vsyncpa [#allocation3], 0  ;;  %s702_s0 = inlined_call_operand.hbm [shape: f32[2,64], index: 0, kind: input, shape index: {}]   ;;  %s703_s1 = inlined_call_operand.hbm [shape: f32[64,640], index: 1, kind: input, shape index: {}]   ;;  %s704_s2 = inlined_call_operand.vmem [shape: f32[1,640], index: 2, kind: input, shape index: {}]   ;;  %s705_s3 = inlined_call_operand.hbm [shape: f32[2,640], index: 3, kind: output, shape index: {}]  }
   0x1   :  { %9 = vsyncpa [#allocation6], 0 }
   0x2   :  { %10 = vsyncpa [#allocation4], 0  ;;  %s587_s12 = smov [#allocation2]   ;;  %s588_s14 = smov [#allocation5]  }
   0x3   :  { %s17_s13 = sshll.u32 %s587_s12, 4  ;;  %s26_s15 = sshll.u32 %s588_s14, 4  ;;  %s18_s13 = int_to_ptr.vmem [resolvable:$true] %s17_s13  ;;  %s615_s15 = int_to_ptr.vmem [resolvable:$true] %s26_s15 }
   0x4   :  { %s515_s18 = scalar_lea.hbm %s702_s0, 32 }
   0x5   :  { %p516_p0 = scmp.ne.s32.totalorder %s702_s0, %s515_s18  ;;  %p519_p1 = scmp.lt.u32.totalorder %s515_s18, %s702_s0 }
   0x7   :  { %p521_p2 = pnand %p519_p1, %p516_p0 }
   0x9   :  { %524 = shalt.err (!%p521_p2)
}
   0xa   :  { %s525_s23 = scalar_lea.vmem %s18_s13, 32  ;;  %p530_p4 = scmp.lt.s32.totalorder %s18_s13, %s18_s13 }
   0xb   :  { %p526_p3 = scmp.ne.s32.totalorder %s18_s13, %s525_s23  ;;  %p531_p5 = scmp.lt.s32.totalorder %s525_s23, %s525_s23 }
   0xd   :  { %p532_p6 = por %p531_p5, %p530_p4 }
   0xf   :  { %p533_p7 = pnand %p532_p6, %p526_p3 }
  0x11   :  { %536 = shalt.err (!%p533_p7)
}
  0x12   :  { %20 = dma.hbm_to_vmem [thread:$0]  %s702_s0, 32, %s18_s13, [#allocation3]  }
  0x13   :  { %s537_s28 = scalar_lea.hbm %s703_s1, 5120 }
  0x14   :  { %p538_p8 = scmp.ne.s32.totalorder %s703_s1, %s537_s28  ;;  %p541_p9 = scmp.lt.u32.totalorder %s537_s28, %s703_s1 }
  0x16   :  { %p543_p10 = pnand %p541_p9, %p538_p8 }
  0x18   :  { %546 = shalt.err (!%p543_p10)
}
  0x19   :  { %s547_s6 = scalar_lea.vmem %s615_s15, 5120  ;;  %p552_p12 = scmp.lt.s32.totalorder %s615_s15, %s615_s15 }
  0x1a   :  { %p548_p11 = scmp.ne.s32.totalorder %s615_s15, %s547_s6  ;;  %p553_p13 = scmp.lt.s32.totalorder %s547_s6, %s547_s6 }
  0x1c   :  { %p554_p0 = por %p553_p13, %p552_p12 }
  0x1e   :  { %p555_p1 = pnand %p554_p0, %p548_p11 }
  0x20   :  { %558 = shalt.err (!%p555_p1)
}
  0x21   :  { %s589_s0 = smov 640   ;;  %s590_s7 = smov 40  }
  0x22   :  { %32 = dma.hbm_to_vmem [thread:$0]  %s703_s1, 5120, %s615_s15, [#allocation6], %s589_s0, %s589_s0, %s590_s7  }
  0x23   :  { %581 = dma.done.wait [#allocation3], 32  }
  0x24   :  { %582 = vsyncadd [#allocation3], 4294967264 }
  0x25   :  { %583 = dma.done.wait [#allocation6], 5120  }
  0x26   :  { %584 = vsyncadd [#allocation6], 4294962176  ;;  %v591_v0 = vmov 0.0   ;;  %v43_v1 = vld [vmem:[#allocation5 + $0x8] sm:$0xff]  ;;  %v48_v2 = vld [vmem:[#allocation5 + $0x30] sm:$0xff]  ;;  %vm109_vm0 = vcmask 523264   ;;  %v84_v63 = vlaneseq }
  0x27   :  { %177 = vmatprep.mubr.f32.mxu0 %v591_v0  ;;  %248 = vmatprep.mubr.f32.mxu1 %v591_v0  ;;  %v45_v3 = vld [vmem:[#allocation5 + $0x18] sm:$0xff]  ;;  %v443_v4 = vpack.c.bf16 %v48_v2, %v43_v1  ;;  %v50_v5 = vld [vmem:[#allocation5 + $0x40] sm:$0xff]  ;;  %v47_v7 = vld [vmem:[#allocation5 + $0x28] sm:$0xff]  ;;  %v592_v53 = vmov 0.0|0.0   ;;  %vm593_vm1 = vmmov 0   ;;  %vm325_vm2 = vcmask 1041408  }
  0x28   :  { %v42_v6 = vld [vmem:[#allocation5] sm:$0xff]  ;;  %v459_v8 = vpack.c.bf16 %v50_v5, %v45_v3  ;;  %v44_v10 = vld [vmem:[#allocation5 + $0x10] sm:$0xff]  ;;  %v49_v11 = vld [vmem:[#allocation5 + $0x38] sm:$0xff]  ;;  %v85_v1 = vshrl.u32 %v84_v63, 7 }
  0x29   :  { %v445_v9 = vpack.c.bf16 %v47_v7, %v42_v6  ;;  %v53_v12 = vld [vmem:[#allocation5 + $0x58] sm:$0xff]  ;;  %444 = vmatprep.subr.bf16.mxu0 %v443_v4  ;;  %v461_v13 = vpack.c.bf16 %v49_v11, %v44_v10  ;;  %v58_v14 = vld [vmem:[#allocation5 + $0x80] sm:$0xff]  ;;  %v55_v15 = vld [vmem:[#allocation5 + $0x68] sm:$0xff] }
  0x2a   :  { %v60_v16 = vld [vmem:[#allocation5 + $0x90] sm:$0xff]  ;;  %460 = vmatprep.subr.bf16.mxu1 %v459_v8  ;;  %v447_v17 = vpack.c.bf16 %v58_v14, %v53_v12  ;;  %v57_v20 = vld [vmem:[#allocation5 + $0x78] sm:$0xff]  ;;  %v54_v21 = vld [vmem:[#allocation5 + $0x60] sm:$0xff]  ;;  %v86_v2 = vsub.s32 0, %v85_v1  ;;  %v94_v4 = vsub.s32 2, %v85_v1  ;;  %v98_v5 = vsub.s32 3, %v85_v1 }
  0x2b   :  { %446 = vmatpush1.bf16.msra.mxu0 %v445_v9  ;;  %v463_v18 = vpack.c.bf16 %v60_v16, %v55_v15  ;;  %v52_v19 = vld [vmem:[#allocation5 + $0x50] sm:$0xff]  ;;  %462 = vmatpush1.bf16.msra.mxu1 %v461_v13  ;;  %v59_v23 = vld [vmem:[#allocation5 + $0x88] sm:$0xff]  ;;  %v65_v28 = vld [vmem:[#allocation5 + $0xb8] sm:$0xff] }
  0x2c   :  { %v449_v22 = vpack.c.bf16 %v57_v20, %v52_v19  ;;  %v63_v24 = vld [vmem:[#allocation5 + $0xa8] sm:$0xff]  ;;  %v68_v25 = vld [vmem:[#allocation5 + $0xd0] sm:$0xff]  ;;  %448 = vmatprep.subr.bf16.mxu0 %v447_v17  ;;  %v465_v26 = vpack.c.bf16 %v59_v23, %v54_v21  ;;  %v70_v29 = vld [vmem:[#allocation5 + $0xe0] sm:$0xff] }
  0x2d   :  { %464 = vmatprep.subr.bf16.mxu1 %v463_v18  ;;  %v451_v27 = vpack.c.bf16 %v68_v25, %v63_v24  ;;  %v62_v30 = vld [vmem:[#allocation5 + $0xa0] sm:$0xff]  ;;  %v467_v31 = vpack.c.bf16 %v70_v29, %v65_v28  ;;  %v67_v32 = vld [vmem:[#allocation5 + $0xc8] sm:$0xff]  ;;  %v64_v33 = vld [vmem:[#allocation5 + $0xb0] sm:$0xff] }
  0x2e   :  { %v69_v34 = vld [vmem:[#allocation5 + $0xd8] sm:$0xff]  ;;  %v453_v35 = vpack.c.bf16 %v67_v32, %v62_v30  ;;  %v78_v37 = vld [vmem:[#allocation5 + $0x120] sm:$0xff]  ;;  %v75_v38 = vld [vmem:[#allocation5 + $0x108] sm:$0xff] }
  0x2f   :  { %450 = vmatpush1.bf16.msra.mxu0 %v449_v22  ;;  %v73_v36 = vld [vmem:[#allocation5 + $0xf8] sm:$0xff]  ;;  %466 = vmatpush1.bf16.msra.mxu1 %v465_v26  ;;  %v469_v39 = vpack.c.bf16 %v69_v34, %v64_v33  ;;  %v80_v41 = vld [vmem:[#allocation5 + $0x130] sm:$0xff]  ;;  %v74_v45 = vld [vmem:[#allocation5 + $0x100] sm:$0xff]  ;;  %v102_v22 = vsub.s32 4, %v85_v1 }
  0x30   :  { %452 = vmatprep.subr.bf16.mxu0 %v451_v27  ;;  %v455_v40 = vpack.c.bf16 %v78_v37, %v73_v36  ;;  %v72_v42 = vld [vmem:[#allocation5 + $0xf0] sm:$0xff]  ;;  %v77_v43 = vld [vmem:[#allocation5 + $0x118] sm:$0xff]  ;;  %468 = vmatprep.subr.bf16.mxu1 %v467_v31  ;;  %v471_v44 = vpack.c.bf16 %v80_v41, %v75_v38  ;;  %v79_v46 = vld [vmem:[#allocation5 + $0x128] sm:$0xff] }
  0x31   :  { %v457_v47 = vpack.c.bf16 %v77_v43, %v72_v42  ;;  %v473_v48 = vpack.c.bf16 %v79_v46, %v74_v45  ;;  %v46_v49 = vld [vmem:[#allocation5 + $0x20] sm:$0xff]  ;;  %v51_v50 = vld [vmem:[#allocation5 + $0x48] sm:$0xff]  ;;  %v41_v51 = vld [vmem:[#allocation2] sm:$0x3] }
  0x32   :  { %v476_v52 = vpack.c.bf16 %v51_v50, %v46_v49  ;;  %v56_v54 = vld [vmem:[#allocation5 + $0x70] sm:$0xff]  ;;  %v61_v55 = vld [vmem:[#allocation5 + $0x98] sm:$0xff]  ;;  %v66_v57 = vld [vmem:[#allocation5 + $0xc0] sm:$0xff] }
  0x33   :  { %454 = vmatpush1.bf16.msra.mxu0 %v453_v35  ;;  %470 = vmatpush1.bf16.msra.mxu1 %v469_v39  ;;  %v479_v56 = vpack.c.bf16 %v61_v55, %v56_v54  ;;  %v71_v58 = vld [vmem:[#allocation5 + $0xe8] sm:$0xff]  ;;  %v76_v60 = vld [vmem:[#allocation5 + $0x110] sm:$0xff]  ;;  %v81_v61 = vld [vmem:[#allocation5 + $0x138] sm:$0xff] }
  0x34   :  { %456 = vmatprep.subr.bf16.mxu0 %v455_v40  ;;  %472 = vmatprep.subr.bf16.mxu1 %v471_v44  ;;  %v482_v59 = vpack.c.bf16 %v71_v58, %v66_v57  ;;  %v485_v62 = vpack.c.bf16 %v81_v61, %v76_v60  ;;  %v82_v3 = vld [vmem:[%s704_s2] sm:$0x1f]  ;;  %s594_s2 = smov [#allocation7]  }
  0x35   :  { %v87_v6 = vrot.slane %v82_v3, %v86_v2  ;;  %v95_v7 = vrot.slane %v82_v3, %v94_v4  ;;  %v99_v9 = vrot.slane %v82_v3, %v98_v5  ;;  %v103_v23 = vrot.slane %v82_v3, %v102_v22  ;;  %s402_s11 = sshll.u32 %s594_s2, 4  ;;  %s403_s11 = int_to_ptr.vmem [resolvable:$true] %s402_s11 }
  0x36   :  { %s559_s12 = scalar_lea.vmem %s403_s11, 160  ;;  %p564_p3 = scmp.lt.s32.totalorder %s403_s11, %s403_s11 }
  0x37   :  { %458 = vmatpush1.bf16.msra.mxu0 %v457_v47  ;;  %474 = vmatpush1.bf16.msra.mxu1 %v473_v48  ;;  %p560_p2 = scmp.ne.s32.totalorder %s403_s11, %s559_s12  ;;  %p565_p4 = scmp.lt.s32.totalorder %s559_s12, %s559_s12 }
  0x38   :  { %475 = vmatprep.subr.bf16.mxu0 %v592_v53 }
  0x39   :  { %p566_p5 = por %p565_p4, %p564_p3 }
  0x3a   :  { %412 = vmatmul.mubr.msk.f32.vlgmr.msra.gmra.mrb[0].mxu0 %vm109_vm0, %v41_v51  ;;  %413 = vmatmul.mubr.msk.f32.vlgmr.msra.gmra.mrb[0].mxu1 %vm109_vm0, %v41_v51 }
  0x3b   :  { %477 = vmatpush3.bf16.msra.mxu0 %v476_v52  ;;  %440 = vmatprep.mubr.msk.f32.mxu0 %vm593_vm1, %v591_v0  ;;  %v90_v0 = vsub.s32 1, %v85_v1  ;;  %p567_p6 = pnand %p566_p5, %p560_p2 }
  0x3c   :  { %478 = vmatprep.subr.bf16.mxu0 %v592_v53 }
  0x3d   :  { %v91_v8 = vrot.slane %v82_v3, %v90_v0 }
  0x3f   :  { %480 = vmatpush3.bf16.msra.mxu0 %v479_v56 }
  0x40   :  { %481 = vmatprep.subr.bf16.mxu0 %v592_v53 }
  0x43   :  { %483 = vmatpush3.bf16.msra.mxu0 %v482_v59 }
  0x44   :  { %484 = vmatprep.subr.bf16.mxu0 %v592_v53 }
  0x47   :  { %486 = vmatpush3.bf16.msra.mxu0 %v485_v62 }
  0x4a   :  { %441 = vmatmul.mubr.msk.f32.vlgmr.msra.gmra.mrb[2].mxu0 %vm109_vm0, %v41_v51 }
 0x10d   :  { %v179_v10 = vpop.f32.mrb[0].mxu0  ;;  %v250_v12 = vpop.f32.mrb[0].mxu1 }
 0x10e   :  { %v655_v11 = vadd.f32 %v179_v10, %v87_v6  ;;  %v181_v13 = vpop.f32.mrb[1].mxu0  ;;  %v657_v14 = vadd.f32 %v250_v12, %v95_v7  ;;  %v252_v15 = vpop.f32.mrb[1].mxu1 }
 0x10f   :  { %v659_v16 = vadd.f32 %v181_v13, %v91_v8  ;;  %v661_v17 = vadd.f32 %v252_v15, %v99_v9 }
 0x110   :  { %v326_v18 = vsel %vm325_vm2, %v655_v11, -inf  ;;  %v354_v19 = vsel %vm325_vm2, %v657_v14, -inf }
 0x111   :  { %327 = vmax.xlane.f32.xlu0 %v326_v18  ;;  %355 = vmax.xlane.f32.xlu1 %v354_v19  ;;  %v368_v20 = vsel %vm325_vm2, %v661_v17, -inf  ;;  %v340_v21 = vsel %vm325_vm2, %v659_v16, -inf }
 0x115   :  { %341 = vmax.xlane.f32.xlu0 %v340_v21  ;;  %369 = vmax.xlane.f32.xlu1 %v368_v20 }
 0x11d   :  { %v321_v24 = vpop.f32.mrb[2].mxu0 }
 0x11e   :  { %v671_v25 = vadd.f32 %v321_v24, %v103_v23  ;;  %v442_v26 = vpop.f32.mrb[3].mxu0 }
 0x120   :  { %v382_v27 = vsel %vm325_vm2, %v671_v25, -inf }
 0x121   :  { %383 = vmax.xlane.f32.xlu0 %v382_v27 }
 0x19e   :  { %v328_v28 = vpop.xlane.xlu0 %327  ;;  %v356_v29 = vpop.xlane.xlu1 %355 }
 0x19f   :  { %v329_v30 = vsub.f32 %v655_v11, %v328_v28  ;;  %v357_v31 = vsub.f32 %v657_v14, %v356_v29 }
 0x1a1   :  { %v330_v32 = vmul.f32 1.442695, %v329_v30  ;;  %v358_v33 = vmul.f32 1.442695, %v357_v31 }
 0x1a2   :  { %v342_v34 = vpop.xlane.xlu0 %341  ;;  %v370_v35 = vpop.xlane.xlu1 %369 }
 0x1a3   :  { %495 = vpow2.f32 %v330_v32  ;;  %v343_v36 = vsub.f32 %v659_v16, %v342_v34  ;;  %v371_v37 = vsub.f32 %v661_v17, %v370_v35 }
 0x1a4   :  { %497 = vpow2.f32 %v358_v33 }
 0x1a5   :  { %v344_v38 = vmul.f32 1.442695, %v343_v36  ;;  %v372_v39 = vmul.f32 1.442695, %v371_v37 }
 0x1a7   :  { %499 = vpow2.f32 %v344_v38 }
 0x1a8   :  { %501 = vpow2.f32 %v372_v39 }
 0x1ad   :  { %v496_v40 = vpop.eup %495 }
 0x1ae   :  { %v384_v41 = vpop.xlane.xlu0 %383  ;;  %v332_v42 = vsel %vm325_vm2, %v496_v40, 0.0  ;;  %v498_v43 = vpop.eup %497 }
 0x1af   :  { %v385_v44 = vsub.f32 %v671_v25, %v384_v41  ;;  %333 = vadd.xlane.f32.xlu1 %v332_v42  ;;  %v360_v47 = vsel %vm325_vm2, %v498_v43, 0.0 }
 0x1b1   :  { %v500_v45 = vpop.eup %499  ;;  %v386_v46 = vmul.f32 1.442695, %v385_v44 }
 0x1b2   :  { %v346_v48 = vsel %vm325_vm2, %v500_v45, 0.0  ;;  %v502_v49 = vpop.eup %501 }
 0x1b3   :  { %503 = vpow2.f32 %v386_v46  ;;  %361 = vadd.xlane.f32.xlu1 %v360_v47  ;;  %347 = vadd.xlane.f32.xlu0 %v346_v48  ;;  %v374_v50 = vsel %vm325_vm2, %v502_v49, 0.0 }
 0x1b7   :  { %375 = vadd.xlane.f32.xlu0 %v374_v50 }
 0x1bd   :  { %v504_v51 = vpop.eup %503 }
 0x1be   :  { %v388_v52 = vsel %vm325_vm2, %v504_v51, 0.0 }
 0x1bf   :  { %389 = vadd.xlane.f32.xlu1 %v388_v52 }
 0x23c   :  { %v334_v53 = vpop.xlane.xlu1 %333 }
 0x23d   :  { %505 = vlog2.f32 %v334_v53 }
 0x240   :  { %v362_v54 = vpop.xlane.xlu1 %361  ;;  %v348_v55 = vpop.xlane.xlu0 %347 }
 0x241   :  { %507 = vlog2.f32 %v362_v54 }
 0x242   :  { %509 = vlog2.f32 %v348_v55 }
 0x244   :  { %v376_v56 = vpop.xlane.xlu0 %375 }
 0x245   :  { %511 = vlog2.f32 %v376_v56 }
 0x247   :  { %v506_v57 = vpop.eup %505 }
 0x248   :  { %v336_v58 = vmul.f32 0.6931472, %v506_v57 }
 0x24a   :  { %v337_v59 = vadd.f32 %v336_v58, %v328_v28 }
 0x24b   :  { %v508_v60 = vpop.eup %507 }
 0x24c   :  { %v510_v61 = vpop.eup %509  ;;  %v338_v62 = vsub.f32 %v655_v11, %v337_v59  ;;  %v364_v63 = vmul.f32 0.6931472, %v508_v60  ;;  %v390_v1 = vpop.xlane.xlu1 %389 }
 0x24d   :  { %v350_v2 = vmul.f32 0.6931472, %v510_v61  ;;  %513 = vlog2.f32 %v390_v1 }
 0x24e   :  { %339 = vst [vmem:[#allocation7] sm:$0x3] %v338_v62  ;;  %v365_v3 = vadd.f32 %v364_v63, %v356_v29 }
 0x24f   :  { %v512_v4 = vpop.eup %511  ;;  %v351_v0 = vadd.f32 %v350_v2, %v342_v34 }
 0x250   :  { %v366_v5 = vsub.f32 %v657_v14, %v365_v3  ;;  %v378_v6 = vmul.f32 0.6931472, %v512_v4 }
 0x251   :  { %v352_v7 = vsub.f32 %v659_v16, %v351_v0 }
 0x252   :  { %367 = vst [vmem:[#allocation7 + $0x4] sm:$0x3] %v366_v5  ;;  %v379_v8 = vadd.f32 %v378_v6, %v370_v35 }
 0x253   :  { %353 = vst [vmem:[#allocation7 + $0x2] sm:$0x3] %v352_v7 }
 0x254   :  { %v380_v9 = vsub.f32 %v661_v17, %v379_v8 }
 0x256   :  { %381 = vst [vmem:[#allocation7 + $0x6] sm:$0x3] %v380_v9 }
 0x257   :  { %v514_v10 = vpop.eup %513 }
 0x258   :  { %v392_v11 = vmul.f32 0.6931472, %v514_v10 }
 0x25a   :  { %v393_v12 = vadd.f32 %v392_v11, %v384_v41 }
 0x25c   :  { %v394_v13 = vsub.f32 %v671_v25, %v393_v12 }
 0x25e   :  { %395 = vst [vmem:[#allocation7 + $0x8] sm:$0x3] %v394_v13 }
 0x25f   :  { %570 = shalt.err (!%p567_p6)
}
 0x260   :  { %s571_s15 = scalar_lea.hbm %s705_s3, 160 }
 0x261   :  { %p572_p7 = scmp.ne.s32.totalorder %s705_s3, %s571_s15  ;;  %p575_p8 = scmp.lt.u32.totalorder %s571_s15, %s705_s3 }
 0x263   :  { %p577_p9 = pnand %p575_p8, %p572_p7 }
 0x265   :  { %580 = shalt.err (!%p577_p9)
}
 0x266   :  { %405 = dma.vmem_to_hbm [thread:$0]  %s403_s11, 160, %s705_s3, [#allocation4]  }
 0x267   :  { %585 = dma.done.wait [#allocation4], 160  }
 0x268   :  { %586 = vsyncadd [#allocation4], 4294967136 }
 0x269   :  { %409 = vsyncpa [#allocation3], 1 }
 0x26a   :  { %410 = vsyncpa [#allocation6], 1 }
 0x26b   :  { %411 = vsyncpa [#allocation4], 1 }

</bundles_post_ra>
